<compile_context>
chip_gen: v5e
topology: v5e:2x2
jax: 0.10.0
libtpu: 0.0.40
codegen_flags: <defaults>
</compile_context>

<pallas_src>
import functools

import jax
import jax.numpy as jnp
from jax.experimental import pallas as pl
from jax.experimental.pallas import tpu as pltpu

LANE = 128
SUBLANE = 8
ROW_ALIGN = 16          # row alignment for small inputs (safe for bf16 tiles)
TM_TARGET = 4096        # rows per tile: 4096*128*4B = 2 MiB per f32 input tile
NEUTRAL_LOGIT = -30.0   # sigmoid(-30) ~ 9e-14  ->  loss(x=-30, t=0) == 0.0 in f32


def _focal_loss_kernel(x_ref, t_ref, o_ref, *, alpha, gamma, tm, n_inner,
                       n_rows, ragged_possible):
    c = pl.program_id(0)   # split index ("parallel"; one per TensorCore on v7x)
    i = pl.program_id(1)   # streaming row-tile index ("arbitrary")

    @pl.when(i == 0)
    def _():
        o_ref[...] = jnp.zeros_like(o_ref)

    x = x_ref[...].astype(jnp.float32)
    t = t_ref[...].astype(jnp.float32)

    # p = sigmoid(x); numerically-stable BCE-with-logits reusing the sigmoid:
    #   log1p(exp(-|x|)) == -log(max(p, 1-p))   (one EUP log instead of exp+log1p)
    # NOTE: underflows to 0 (instead of ~e^-|x|) once |x| >~ 17; absolute error
    # < ~1e-7/elem, harmless for the mean/sum reduction.
    p = jax.nn.sigmoid(x)
    ce = jnp.maximum(x, 0.0) - x * t - jnp.log(jnp.maximum(p, 1.0 - p))

    # 1 - p_t  ==  p + t - 2*p*t
    q = p + t - 2.0 * (p * t)
    if gamma == 2.0:
        mod = q * q                      # avoid pow -> no exp/log on the EUP
    elif gamma == 1.0:
        mod = q
    elif gamma == 0.0:
        mod = None
    else:
        mod = q ** gamma
    loss = ce if mod is None else ce * mod

    if alpha >= 0:
        # alpha*t + (1-alpha)*(1-t)  ==  (1-alpha) + (2*alpha-1)*t
        loss = ((1.0 - alpha) + (2.0 * alpha - 1.0) * t) * loss

    def accumulate(v):
        # VPU-only add tree into the vreg-shaped resident output block; the
        # cross-lane reduce of the tiny (n_splits, 8, 128) result happens in
        # the wrapper.
        o_ref[0] += v.reshape(tm // SUBLANE, SUBLANE, LANE).sum(axis=0)

    if not ragged_possible:
        accumulate(loss)
    else:
        row0 = (c * n_inner + i) * tm       # logical (unclamped) first row

        @pl.when(row0 + tm <= n_rows)       # common case: fully valid tile
        def _():
            accumulate(loss)

        @pl.when(row0 + tm > n_rows)        # ragged / overhanging tile(s) only
        def _():
            # mask by row index only (no per-lane flat index -> no i32 overflow,
            # ~2 ops/elem); OOB rows may hold garbage, jnp.where -> 0 is safe.
            rid = jax.lax.broadcasted_iota(jnp.int32, (tm, 1), 0) + row0
            accumulate(jnp.where(rid < n_rows, loss, 0.0))


def _num_tensorcores():
    """2 for chips with two TensorCores (v7x, v4, v5p), else 1 (v5e, v6e)."""
    try:
        kind = jax.devices()[0].device_kind.lower()
    except Exception:
        return 1
    return 2 if ("v7" in kind or "v4" in kind or "v5p" in kind) else 1


def sigmoid_focal_loss(inputs, targets, alpha=0.25, gamma=2.0, reduction="mean"):
    assert inputs.shape == targets.shape
    if reduction not in ("mean", "sum"):
        # TODO(synk): 'none' reduction (unreduced elementwise loss) not implemented.
        raise ValueError(f"Unsupported reduction: {reduction}")

    n_total = inputs.size
    flat_x = inputs.reshape(-1)
    flat_t = targets.reshape(-1)   # consumed in native dtype (bf16/int8/bool OK)

    # Pad only up to the next LANE multiple for large inputs (<=127 elements,
    # and only when n_total isn't already lane-aligned), or to a ROW_ALIGN*LANE
    # multiple for small (single-tile) inputs.  Padding is loss-neutral
    # (x = -30, t = 0 -> exactly 0 loss).  Never pad rows to a full grid
    # multiple: ragged row tiles are masked in-kernel instead.
    multiple = ROW_ALIGN * LANE if n_total <= TM_TARGET * LANE else LANE
    n_padded = ((n_total + multiple - 1) // multiple) * multiple
    pad = n_padded - n_total
    if pad:
        flat_x = jnp.pad(flat_x, (0, pad), constant_values=NEUTRAL_LOGIT)
        flat_t = jnp.pad(flat_t, (0, pad), constant_values=0)

    rows = n_padded // LANE
    x2 = flat_x.reshape(rows, LANE)
    t2 = flat_t.reshape(rows, LANE)

    # Tiling / grid: small inputs -> one block equal to the full array (no
    # mask needed); large inputs -> TM_TARGET-row tiles.  Two-way "parallel"
    # split only on 2-TC chips and only for large streams.
    tm = rows if rows <= TM_TARGET else TM_TARGET
    n_splits = 2 if (_num_tensorcores() == 2 and rows >= 2 * TM_TARGET) else 1
    n_inner = pl.cdiv(pl.cdiv(rows, n_splits), tm)
    last_block = pl.cdiv(rows, tm) - 1
    ragged_possible = (n_splits * n_inner * tm) != rows

    def in_idx(c, i):
        # Clamp so overhanging logical blocks just re-read the last real block;
        # their contribution is zeroed by the in-kernel row mask.
        return (jnp.minimum(c * n_inner + i, last_block), 0)

    kernel = functools.partial(
        _focal_loss_kernel,
        alpha=float(alpha), gamma=float(gamma), tm=tm, n_inner=n_inner,
        n_rows=rows, ragged_possible=ragged_possible)

    partial_sums = pl.pallas_call(
        kernel,
        out_shape=jax.ShapeDtypeStruct((n_splits, SUBLANE, LANE), jnp.float32),
        grid_spec=pltpu.PrefetchScalarGridSpec(
            num_scalar_prefetch=0,
            grid=(n_splits, n_inner),
            in_specs=[
                pl.BlockSpec((tm, LANE), in_idx),
                pl.BlockSpec((tm, LANE), in_idx),
            ],
            out_specs=pl.BlockSpec((1, SUBLANE, LANE), lambda c, i: (c, 0, 0)),
        ),
        compiler_params=pltpu.CompilerParams(
            dimension_semantics=("parallel", "arbitrary"),
            vmem_limit_bytes=32 * 1024 * 1024),
    )(x2, t2)

    total = jnp.sum(partial_sums)
    if reduction == "mean":
        total = total / n_total
    return total


def sigmoid_focal_loss_ref(inputs, targets, alpha=0.25, gamma=2.0):
    x = inputs.astype(jnp.float32)
    t = targets.astype(jnp.float32)
    p = jax.nn.sigmoid(x)
    ce = jnp.maximum(x, 0.0) - x * t + jnp.log1p(jnp.exp(-jnp.abs(x)))
    p_t = p * t + (1 - p) * (1 - t)
    loss = ce * (1 - p_t) ** gamma
    alpha_t = alpha * t + (1 - alpha) * (1 - t)
    loss = alpha_t * loss
    return loss.mean()


if __name__ == "__main__":
    key = jax.random.PRNGKey(0)
    k1, k2 = jax.random.split(key)

    # small NCHW shapes consistent with a dense prediction head
    B, C, H, W = 2, 4, 16, 16
    logits = jax.random.normal(k1, (B, C, H, W), dtype=jnp.float32)
    targets = (jax.random.uniform(k2, (B, C, H, W)) > 0.5).astype(jnp.float32)

    loss = sigmoid_focal_loss(logits, targets, alpha=0.25, gamma=2.0,
                              reduction="mean")
    loss = jax.block_until_ready(loss)

    ref = sigmoid_focal_loss_ref(logits, targets)
    assert jnp.allclose(loss, ref, rtol=1e-5, atol=1e-6), (loss, ref)

    print("KERNEL_OK")
</pallas_src>

<mosaic_0001>
module attributes {stable_mosaic.version = 11 : i64} {
  func.func @_focal_loss_kernel(%arg0: i32, %arg1: i32, %arg2: memref<16x128xf32, #tpu.memory_space<vmem>>, %arg3: memref<16x128xf32, #tpu.memory_space<vmem>>, %arg4: memref<1x8x128xf32, #tpu.memory_space<vmem>>) attributes {dimension_semantics = [#tpu.dimension_semantics<parallel>, #tpu.dimension_semantics<arbitrary>], iteration_bounds = array<i64: 1, 1>, scalar_prefetch = 0 : i64, scratch_operands = 0 : i64, tpu.core_type = #tpu.core_type<tc>, window_params = [{transform_indices = @transform_0, window_bounds = array<i64: 16, 128>}, {transform_indices = @transform_1, window_bounds = array<i64: 16, 128>}, {transform_indices = @transform_2, window_bounds = array<i64: 1, 8, 128>}]} {
    %c0_i32 = arith.constant 0 : i32
    %0 = arith.cmpi eq, %arg1, %c0_i32 : i32
    %1 = arith.extui %0 : i1 to i32
    %c0_i32_0 = arith.constant 0 : i32
    %2 = arith.cmpi ne, %1, %c0_i32_0 : i32
    scf.if %2 {
      %cst_16 = arith.constant 0.000000e+00 : f32
      %39 = vector.broadcast %cst_16 : f32 to vector<1x8x128xf32>
      %c0_17 = arith.constant 0 : index
      %c0_18 = arith.constant 0 : index
      %c0_19 = arith.constant 0 : index
      %40 = vector.load %arg4[%c0_17, %c0_18, %c0_19] : memref<1x8x128xf32, #tpu.memory_space<vmem>>, vector<1x8x128xf32>
      tpu.vector_store %arg4[%c0_17, %c0_18, %c0_19], %39 {strides = array<i32>} : memref<1x8x128xf32, #tpu.memory_space<vmem>>, vector<1x8x128xf32>,
    } else {
    }
    %c0 = arith.constant 0 : index
    %c0_1 = arith.constant 0 : index
    %3 = vector.load %arg2[%c0, %c0_1] : memref<16x128xf32, #tpu.memory_space<vmem>>, vector<16x128xf32>
    %c0_2 = arith.constant 0 : index
    %c0_3 = arith.constant 0 : index
    %4 = vector.load %arg3[%c0_2, %c0_3] : memref<16x128xf32, #tpu.memory_space<vmem>>, vector<16x128xf32>
    %5 = arith.negf %3 : vector<16x128xf32>
    %6 = math.exp %5 : vector<16x128xf32>
    %cst = arith.constant 1.000000e+00 : f32
    %7 = vector.broadcast %cst : f32 to vector<16x128xf32>
    %8 = arith.addf %7, %6 : vector<16x128xf32>
    %9 = arith.divf %7, %8 : vector<16x128xf32>
    %cst_4 = arith.constant 0.000000e+00 : f32
    %10 = vector.broadcast %cst_4 : f32 to vector<16x128xf32>
    %11 = arith.maximumf %3, %10 : vector<16x128xf32>
    %12 = arith.mulf %3, %4 : vector<16x128xf32>
    %13 = arith.subf %11, %12 : vector<16x128xf32>
    %cst_5 = arith.constant 1.000000e+00 : f32
    %14 = vector.broadcast %cst_5 : f32 to vector<16x128xf32>
    %15 = arith.subf %14, %9 : vector<16x128xf32>
    %16 = arith.maximumf %9, %15 : vector<16x128xf32>
    %17 = math.log %16 : vector<16x128xf32>
    %18 = arith.subf %13, %17 : vector<16x128xf32>
    %19 = arith.addf %9, %4 : vector<16x128xf32>
    %20 = arith.mulf %9, %4 : vector<16x128xf32>
    %cst_6 = arith.constant 2.000000e+00 : f32
    %21 = vector.broadcast %cst_6 : f32 to vector<16x128xf32>
    %22 = arith.mulf %21, %20 : vector<16x128xf32>
    %23 = arith.subf %19, %22 : vector<16x128xf32>
    %24 = arith.mulf %23, %23 : vector<16x128xf32>
    %25 = arith.mulf %18, %24 : vector<16x128xf32>
    %cst_7 = arith.constant -5.000000e-01 : f32
    %26 = vector.broadcast %cst_7 : f32 to vector<16x128xf32>
    %27 = arith.mulf %26, %4 : vector<16x128xf32>
    %cst_8 = arith.constant 7.500000e-01 : f32
    %28 = vector.broadcast %cst_8 : f32 to vector<16x128xf32>
    %29 = arith.addf %28, %27 : vector<16x128xf32>
    %30 = arith.mulf %29, %25 : vector<16x128xf32>
    %c0_9 = arith.constant 0 : index
    %c0_10 = arith.constant 0 : index
    %c0_11 = arith.constant 0 : index
    %31 = vector.load %arg4[%c0_9, %c0_10, %c0_11] : memref<1x8x128xf32, #tpu.memory_space<vmem>>, vector<1x8x128xf32>
    %32 = vector.shape_cast %31 : vector<1x8x128xf32> to vector<8x128xf32>
    %33 = vector.shape_cast %30 : vector<16x128xf32> to vector<2x8x128xf32>
    %cst_12 = arith.constant dense<0.000000e+00> : vector<8x128xf32>
    %34 = vector.multi_reduction <add>, %33, %cst_12 [0] : vector<2x8x128xf32> to vector<8x128xf32>
    %35 = arith.addf %32, %34 : vector<8x128xf32>
    %c0_13 = arith.constant 0 : index
    %c0_14 = arith.constant 0 : index
    %c0_15 = arith.constant 0 : index
    %36 = vector.load %arg4[%c0_13, %c0_14, %c0_15] : memref<1x8x128xf32, #tpu.memory_space<vmem>>, vector<1x8x128xf32>
    %37 = vector.shape_cast %36 : vector<1x8x128xf32> to vector<8x128xf32>
    %38 = vector.shape_cast %35 : vector<8x128xf32> to vector<1x8x128xf32>
    tpu.vector_store %arg4[%c0_13, %c0_14, %c0_15], %38 {strides = array<i32>} : memref<1x8x128xf32, #tpu.memory_space<vmem>>, vector<1x8x128xf32>,
    return
  }
  func.func @transform_0(%arg0: i32, %arg1: i32) -> (i32, i32) {
    %c1_i32 = arith.constant 1 : i32
    %0 = arith.muli %arg0, %c1_i32 : i32
    %1 = arith.addi %0, %arg1 : i32
    %c0_i32 = arith.constant 0 : i32
    %2 = arith.minsi %1, %c0_i32 : i32
    %c0_i32_0 = arith.constant 0 : i32
    %c0_i32_1 = arith.constant 0 : i32
    return %2, %c0_i32_0 : i32, i32
  }
  func.func @transform_1(%arg0: i32, %arg1: i32) -> (i32, i32) {
    %c1_i32 = arith.constant 1 : i32
    %0 = arith.muli %arg0, %c1_i32 : i32
    %1 = arith.addi %0, %arg1 : i32
    %c0_i32 = arith.constant 0 : i32
    %2 = arith.minsi %1, %c0_i32 : i32
    %c0_i32_0 = arith.constant 0 : i32
    %c0_i32_1 = arith.constant 0 : i32
    return %2, %c0_i32_0 : i32, i32
  }
  func.func @transform_2(%arg0: i32, %arg1: i32) -> (i32, i32, i32) {
    %c0_i32 = arith.constant 0 : i32
    %c0_i32_0 = arith.constant 0 : i32
    %c0_i32_1 = arith.constant 0 : i32
    return %arg0, %c0_i32, %c0_i32_0 : i32, i32, i32
  }
}

</mosaic_0001>

<bundles_post_ra>
// kernel: tpu_custom_call.1
= control target key start
LH: loop header
LB: loop body
LE: loop exit
PB: predicated region body
PF: predicated region fallthrough
CT: control target
= control target key end

     0   :  { %7 = vsyncpa [#allocation3], 0  ;;  %s303_s0 = inlined_call_operand.hbm [shape: f32[16,128], index: 0, kind: input, shape index: {}]   ;;  %s304_s1 = inlined_call_operand.hbm [shape: f32[16,128], index: 1, kind: input, shape index: {}]   ;;  %s305_s2 = inlined_call_operand.hbm [shape: f32[1,8,128], index: 2, kind: output, shape index: {}]  }
   0x1   :  { %8 = vsyncpa [#allocation6], 0 }
   0x2   :  { %9 = vsyncpa [#allocation4], 0  ;;  %s20_s11 = sshll.u32 %s303_s0, 4  ;;  %s269_s12 = smov [#allocation2]   ;;  %s21_s11 = int_to_ptr.hbm [resolvable:$true] %s20_s11 }
   0x3   :  { %s22_s13 = sshll.u32 %s269_s12, 4  ;;  %s39_s16 = sshll.u32 %s304_s1, 4  ;;  %s23_s13 = int_to_ptr.vmem [resolvable:$true] %s22_s13  ;;  %s40_s16 = int_to_ptr.hbm [resolvable:$true] %s39_s16 }
   0x4   :  { %s270_s17 = smov 128   ;;  %s271_s18 = smov 8  }
   0x5   :  { %28 = dma.hbm_to_vmem [thread:$0]  %s21_s11, 256, %s23_s13, [#allocation3], %s270_s17, %s270_s17, %s271_s18  }
   0x6   :  { %s272_s19 = smov [#allocation5]  }
   0x7   :  { %s41_s20 = sshll.u32 %s272_s19, 4  ;;  %s42_s20 = int_to_ptr.vmem [resolvable:$true] %s41_s20 }
   0x8   :  { %47 = dma.hbm_to_vmem [thread:$0]  %s40_s16, 256, %s42_s20, [#allocation6], %s270_s17, %s270_s17, %s271_s18  }
   0x9   :  { %263 = dma.done.wait [#allocation3], 256  }
   0xa   :  { %264 = vsyncadd [#allocation3], 4294967040 }
   0xb   :  { %265 = dma.done.wait [#allocation6], 256  }
   0xc   :  { %266 = vsyncadd [#allocation6], 4294967040  ;;  %v69_v0 = vld [vmem:[#allocation2] sm:$0xff]  ;;  %v295_v1 = vld [vmem:[#allocation2 + $0x8] sm:$0xff]  ;;  %s273_s0 = smov [#allocation7]   ;;  %s156_s23 = sshll.u32 %s305_s2, 4  ;;  %s157_s23 = int_to_ptr.hbm [resolvable:$true] %s156_s23 }
   0xd   :  { %v171_v2 = vmul.f32 -1.442695, %v69_v0  ;;  %v172_v3 = vmul.f32 -1.442695, %v295_v1  ;;  %v71_v23 = vld [vmem:[#allocation5] sm:$0xff]  ;;  %v72_v25 = vld [vmem:[#allocation5 + $0x8] sm:$0xff] }
   0xe   :  { %v111_v40 = vmax.f32 %v69_v0, 0.0  ;;  %v113_v41 = vmul.f32 %v71_v23, %v69_v0  ;;  %v112_v42 = vmax.f32 %v295_v1, 0.0  ;;  %v114_v43 = vmul.f32 %v72_v25, %v295_v1  ;;  %s154_s1 = sshll.u32 %s273_s0, 4  ;;  %s155_s1 = int_to_ptr.vmem [resolvable:$true] %s154_s1 }
   0xf   :  { %179 = vpow2.f32 %v171_v2  ;;  %v139_v47 = vmul.f32 -0.5, %v71_v23  ;;  %v140_v50 = vmul.f32 -0.5, %v72_v25 }
  0x10   :  { %181 = vpow2.f32 %v172_v3  ;;  %v115_v46 = vsub.f32 %v111_v40, %v113_v41  ;;  %v116_v49 = vsub.f32 %v112_v42, %v114_v43 }
  0x11   :  { %v141_v57 = vadd.f32 0.75, %v139_v47  ;;  %v142_v59 = vadd.f32 0.75, %v140_v50 }
  0x15   :  { %v180_v4 = vpop.eup %179 }
  0x16   :  { %v182_v5 = vpop.eup %181  ;;  %v79_v6 = vadd.f32 1.0, %v180_v4 }
  0x17   :  { %v80_v7 = vadd.f32 1.0, %v182_v5 }
  0x18   :  { %183 = vrcp.f32 %v79_v6  ;;  %vm86_vm0 = vweird.f32 %v79_v6  ;;  %v92_v11 = vand.u32 2147483648, %v79_v6  ;;  %v90_v14 = vand.u32 2147483647, %v79_v6 }
  0x19   :  { %185 = vrcp.f32 %v80_v7  ;;  %v107_v15 = vand.u32 2147483648, %v80_v7  ;;  %vm101_vm2 = vweird.f32 %v80_v7  ;;  %v105_v17 = vand.u32 2147483647, %v80_v7 }
  0x1a   :  { %v93_v19 = vor.u32 1.1754944e-38, %v92_v11  ;;  %vm91_vm5 = vcmp.eq.f32.partialorder %v90_v14, 8.507059e+37 }
  0x1b   :  { %v108_v22 = vor.u32 1.1754944e-38, %v107_v15  ;;  %vm106_vm7 = vcmp.eq.f32.partialorder %v105_v17, 8.507059e+37 }
  0x1e   :  { %v184_v8 = vpop.eup %183 }
  0x1f   :  { %v186_v9 = vpop.eup %185  ;;  %v82_v10 = vmul.f32 %v184_v8, %v79_v6  ;;  %vm87_vm1 = vweird.f32 %v184_v8 }
  0x20   :  { %v97_v12 = vmul.f32 %v186_v9, %v80_v7  ;;  %vm102_vm3 = vweird.f32 %v186_v9  ;;  %vm88_vm4 = vmor %vm86_vm0, %vm87_vm1 }
  0x21   :  { %v83_v13 = vsub.f32 1.0, %v82_v10  ;;  %vm103_vm6 = vmor %vm101_vm2, %vm102_vm3 }
  0x22   :  { %v98_v16 = vsub.f32 1.0, %v97_v12 }
  0x23   :  { %v84_v18 = vmul.f32 %v184_v8, %v83_v13 }
  0x24   :  { %v99_v20 = vmul.f32 %v186_v9, %v98_v16 }
  0x25   :  { %v85_v21 = vadd.f32 %v184_v8, %v84_v18 }
  0x26   :  { %v100_v24 = vadd.f32 %v186_v9, %v99_v20 }
  0x27   :  { %v89_v26 = vsel %vm88_vm4, %v184_v8, %v85_v21 }
  0x28   :  { %v94_v27 = vsel %vm91_vm5, %v93_v19, %v89_v26  ;;  %v104_v28 = vsel %vm103_vm6, %v186_v9, %v100_v24 }
  0x29   :  { %v109_v29 = vsel %vm106_vm7, %v108_v22, %v104_v28  ;;  %v117_v30 = vsub.f32 1.0, %v94_v27  ;;  %v129_v31 = vmul.f32 %v94_v27, %v71_v23  ;;  %v127_v36 = vadd.f32 %v94_v27, %v71_v23 }
  0x2a   :  { %v118_v32 = vsub.f32 1.0, %v109_v29  ;;  %v130_v33 = vmul.f32 %v109_v29, %v72_v25  ;;  %v128_v38 = vadd.f32 %v109_v29, %v72_v25 }
  0x2b   :  { %v119_v34 = vmax.f32 %v94_v27, %v117_v30  ;;  %v131_v37 = vmul.f32 2.0, %v129_v31 }
  0x2c   :  { %v120_v35 = vmax.f32 %v109_v29, %v118_v32  ;;  %v132_v39 = vmul.f32 2.0, %v130_v33 }
  0x2d   :  { %187 = vlog2.f32 %v119_v34  ;;  %v133_v44 = vsub.f32 %v127_v36, %v131_v37 }
  0x2e   :  { %189 = vlog2.f32 %v120_v35  ;;  %v134_v45 = vsub.f32 %v128_v38, %v132_v39 }
  0x2f   :  { %v135_v53 = vmul.f32 %v133_v44, %v133_v44 }
  0x30   :  { %v136_v55 = vmul.f32 %v134_v45, %v134_v45 }
  0x33   :  { %v188_v48 = vpop.eup %187 }
  0x34   :  { %v190_v51 = vpop.eup %189  ;;  %v122_v52 = vmul.f32 0.6931472, %v188_v48 }
  0x35   :  { %v124_v54 = vmul.f32 0.6931472, %v190_v51 }
  0x36   :  { %v125_v56 = vsub.f32 %v115_v46, %v122_v52 }
  0x37   :  { %v126_v58 = vsub.f32 %v116_v49, %v124_v54 }
  0x38   :  { %v137_v60 = vmul.f32 %v135_v53, %v125_v56 }
  0x39   :  { %v138_v61 = vmul.f32 %v136_v55, %v126_v58 }
  0x3a   :  { %v143_v62 = vmul.f32 %v141_v57, %v137_v60 }
  0x3b   :  { %v144_v63 = vmul.f32 %v142_v59, %v138_v61 }
  0x3d   :  { %v146_v0 = vadd.f32 %v144_v63, %v143_v62 }
  0x3f   :  { %148 = vst [vmem:[#allocation7] sm:$0xff] %v146_v0 }
  0x40   :  { %159 = dma.vmem_to_hbm [thread:$0]  %s155_s1, 128, %s157_s23, [#allocation4]  }
  0x41   :  { %267 = dma.done.wait [#allocation4], 128  }
  0x42   :  { %268 = vsyncadd [#allocation4], 4294967168 }
  0x43   :  { %164 = vsyncpa [#allocation3], 1 }
  0x44   :  { %165 = vsyncpa [#allocation6], 1 }
  0x45   :  { %166 = vsyncpa [#allocation4], 1 }

</bundles_post_ra>
